<compile_context>
chip_gen: v6e
topology: v6e:2x2x1
jax: 0.10.0
libtpu: 0.0.40
codegen_flags: <defaults>
</compile_context>

<pallas_src>
import jax
import jax.numpy as jnp
from jax.experimental import pallas as pl
from jax.experimental.pallas import tpu as pltpu

# ----------------------------- problem sizes --------------------------------
N, CIN, H, W = 2, 4, 16, 16          # input  (NCHW)
COUT, KH, KW = 8, 3, 3               # conv   (OIHW torch weight layout)
PAD = 1
HW = H * W                           # 256  -> lane axis per batch element
NHW = N * HW                         # 512  -> lane axis with batch folded
K_IM2COL = KH * KW * CIN             # 36   -> contraction dim (taps)
K_PAD = 40                           # 36 taps + 1 bias(ones) row + 3 zero cols
LEAKY_SLOPE = 0.1

# QuantStub (converted) parameters: fixed, deterministic "calibration".
Q_SCALE = 1.0 / 64.0                 # power of two -> folding into W is exact
Q_ZP = 0.0                           # zero_point == 0 (zp terms folded away)
QMIN, QMAX = -128.0, 127.0


# ------------------------------- kernel -------------------------------------
def quant_conv_lrelu_kernel(x_ref, w_ref, o_ref, patches_ref):
    """Whole problem in one invocation, channel-major / lane-dense.

    x_ref       : (N, CIN, HW)    flattened NCHW input
    w_ref       : (COUT, K_PAD)   [Q_SCALE*W | bias | 0 0 0],
                                  col index = (kh*KW + kw)*CIN + ci
    o_ref       : (N, COUT, HW)   channel-major output
    patches_ref : (K_PAD, N*HW)   VMEM scratch: im2col patch matrix + ones rows
    """
    # --- fold batch onto the lane axis (128-aligned lane concat, ~free) ------
    x = jnp.concatenate([x_ref[n] for n in range(N)], axis=1)        # (CIN, 512)

    # --- QuantStub: round + clip; dequant scale is folded into the weights ---
    xq = jnp.clip(jnp.round(x * (1.0 / Q_SCALE)), QMIN, QMAX)        # (CIN, 512)

    # --- lane-position helpers (constant; hoisted, power-of-two shift/and) ---
    col = jax.lax.broadcasted_iota(jnp.int32, (CIN, NHW), 1)
    h_idx = (col >> 4) & (H - 1)      # row within each image   (W == 16)
    w_idx = col & (W - 1)             # column within each image
    h_ok = {-1: h_idx >= 1, 0: None, 1: h_idx < (H - 1)}
    w_ok = {-1: w_idx >= 1, 0: None, 1: w_idx < (W - 1)}

    # --- im2col: 9 XLU lane-rolls + boundary masks -> scratch stores ---------
    for t in range(KH * KW):
        kh, kw = t // KW, t % KW
        dh, dw = kh - PAD, kw - PAD
        shift = dh * W + dw                                 # flat spatial offset
        tap = xq if shift == 0 else pltpu.roll(xq, (-shift) % NHW, axis=1)
        mask = None
        for m in (h_ok[dh], w_ok[dw]):
            if m is not None:
                mask = m if mask is None else (mask & m)
        if mask is not None:
            tap = jnp.where(mask, tap, 0.0)   # zeros padding positions (and any
                                              # cross-batch roll leakage)
        patches_ref[pl.ds(t * CIN, CIN), :] = tap

    # Rows 36..39: ones. Weight col 36 carries the bias, cols 37..39 are zero,
    # and filling them avoids reading uninitialized scratch into the matmul.
    patches_ref[pl.ds(K_IM2COL, K_PAD - K_IM2COL), :] = jnp.ones(
        (K_PAD - K_IM2COL, NHW), jnp.float32)

    # --- single (8,40)@(40,512) f32 MXU matmul (bias via the ones row) -------
    res = jnp.dot(w_ref[...], patches_ref[...],
                  preferred_element_type=jnp.float32)                # (COUT, 512)

    # --- LeakyReLU(0.1) and 128-aligned lane-slice stores --------------------
    res = jnp.where(res > 0, res, LEAKY_SLOPE * res)
    for n in range(N):
        o_ref[n] = res[:, n * HW:(n + 1) * HW]


# ------------------------------- wrapper -------------------------------------
def added_quant_network(x_nchw, w_oihw, bias):
    """Forward pass of Added_Quant_Network with a synthetic YOLO conv block."""
    # Free contiguous reshape (no transpose, no pad).
    x_flat = x_nchw.reshape(N, CIN, HW)
    # torch OIHW -> (COUT, 36); column index = (kh*KW + kw)*CIN + ci to match
    # the tap-major / channel-minor row order of `patches`. Dequant scale is
    # folded in (1/64 is a power of two -> bit-exact); bias sits in column 36.
    w_mat = jnp.transpose(w_oihw, (0, 2, 3, 1)).reshape(COUT, K_IM2COL) * Q_SCALE
    w_pack = (jnp.zeros((COUT, K_PAD), jnp.float32)
              .at[:, :K_IM2COL].set(w_mat)
              .at[:, K_IM2COL].set(bias))

    out_flat = pl.pallas_call(
        quant_conv_lrelu_kernel,
        out_shape=jax.ShapeDtypeStruct((N, COUT, HW), jnp.float32),
        grid_spec=pltpu.PrefetchScalarGridSpec(
            num_scalar_prefetch=0,
            grid=(1,),                                   # single step: kernel is
            in_specs=[                                   # fixed-overhead bound
                pl.BlockSpec((N, CIN, HW), lambda i: (0, 0, 0)),
                pl.BlockSpec((COUT, K_PAD), lambda i: (0, 0)),
            ],
            out_specs=pl.BlockSpec((N, COUT, HW), lambda i: (0, 0, 0)),
            scratch_shapes=[pltpu.VMEM((K_PAD, NHW), jnp.float32)],
        ),
        compiler_params=pltpu.CompilerParams(
            dimension_semantics=("arbitrary",)),
    )(x_flat, w_pack)

    return out_flat.reshape(N, COUT, H, W)               # already NCHW


# --------------------------- pure-JAX reference ------------------------------
def ref_forward(x_nchw, w_oihw, bias):
    xq = jnp.clip(jnp.round(x_nchw * (1.0 / Q_SCALE)) + Q_ZP, QMIN, QMAX)
    xdq = (xq - Q_ZP) * Q_SCALE
    out = jax.lax.conv_general_dilated(
        xdq, w_oihw, window_strides=(1, 1), padding=((PAD, PAD), (PAD, PAD)),
        dimension_numbers=("NCHW", "OIHW", "NCHW"))
    out = out + bias.reshape(1, COUT, 1, 1)
    return jnp.where(out > 0, out, LEAKY_SLOPE * out)


# --------------------------------- main --------------------------------------
if __name__ == "__main__":
    key = jax.random.PRNGKey(0)
    kx, kw, kb = jax.random.split(key, 3)
    x = jax.random.normal(kx, (N, CIN, H, W), dtype=jnp.float32)
    w = jax.random.normal(kw, (COUT, CIN, KH, KW), dtype=jnp.float32) * 0.1
    b = jax.random.normal(kb, (COUT,), dtype=jnp.float32) * 0.1

    out = added_quant_network(x, w, b)
    out = jax.block_until_ready(out)

    ref = ref_forward(x, w, b)
    assert out.shape == (N, COUT, H, W), out.shape
    assert jnp.allclose(out, ref, atol=1e-4, rtol=1e-4), "mismatch vs reference"

    print("KERNEL_OK")
</pallas_src>

<mosaic_0001>
module attributes {stable_mosaic.version = 11 : i64} {
  func.func @quant_conv_lrelu_kernel(%arg0: i32, %arg1: memref<2x4x256xf32, #tpu.memory_space<vmem>>, %arg2: memref<8x40xf32, #tpu.memory_space<vmem>>, %arg3: memref<2x8x256xf32, #tpu.memory_space<vmem>>, %arg4: memref<40x512xf32, #tpu.memory_space<vmem>>) attributes {dimension_semantics = [#tpu.dimension_semantics<arbitrary>], iteration_bounds = array<i64: 1>, scalar_prefetch = 0 : i64, scratch_operands = 1 : i64, tpu.core_type = #tpu.core_type<tc>, window_params = [{pipeline_mode = #tpu.pipeline_mode<synchronous>, transform_indices = @transform_0, window_bounds = array<i64: 2, 4, 256>}, {pipeline_mode = #tpu.pipeline_mode<synchronous>, transform_indices = @transform_1, window_bounds = array<i64: 8, 40>}, {pipeline_mode = #tpu.pipeline_mode<synchronous>, transform_indices = @transform_2, window_bounds = array<i64: 2, 8, 256>}]} {
    %c0 = arith.constant 0 : index
    %c0_0 = arith.constant 0 : index
    %c0_1 = arith.constant 0 : index
    %0 = vector.load %arg1[%c0, %c0_0, %c0_1] : memref<2x4x256xf32, #tpu.memory_space<vmem>>, vector<1x4x256xf32>
    %1 = vector.shape_cast %0 : vector<1x4x256xf32> to vector<4x256xf32>
    %c1 = arith.constant 1 : index
    %c0_2 = arith.constant 0 : index
    %c0_3 = arith.constant 0 : index
    %2 = vector.load %arg1[%c1, %c0_2, %c0_3] : memref<2x4x256xf32, #tpu.memory_space<vmem>>, vector<1x4x256xf32>
    %3 = vector.shape_cast %2 : vector<1x4x256xf32> to vector<4x256xf32>
    %4 = tpu.concatenate %1, %3 in 1 : vector<4x256xf32>, vector<4x256xf32> -> vector<4x512xf32>
    %cst = arith.constant 6.400000e+01 : f32
    %5 = vector.broadcast %cst : f32 to vector<4x512xf32>
    %6 = arith.mulf %4, %5 : vector<4x512xf32>
    %7 = math.roundeven %6 : vector<4x512xf32>
    %cst_4 = arith.constant -1.280000e+02 : f32
    %cst_5 = arith.constant 1.270000e+02 : f32
    %8 = vector.broadcast %cst_4 : f32 to vector<4x512xf32>
    %9 = arith.maximumf %8, %7 : vector<4x512xf32>
    %10 = vector.broadcast %cst_5 : f32 to vector<4x512xf32>
    %11 = arith.minimumf %10, %9 : vector<4x512xf32>
    %12 = tpu.iota {dimensions = array<i32: 1>} : vector<4x512xi32>
    %c4_i32 = arith.constant 4 : i32
    %13 = vector.broadcast %c4_i32 : i32 to vector<4x512xi32>
    %14 = arith.shrsi %12, %13 : vector<4x512xi32>
    %c15_i32 = arith.constant 15 : i32
    %15 = vector.broadcast %c15_i32 : i32 to vector<4x512xi32>
    %16 = arith.andi %14, %15 : vector<4x512xi32>
    %c15_i32_6 = arith.constant 15 : i32
    %17 = vector.broadcast %c15_i32_6 : i32 to vector<4x512xi32>
    %18 = arith.andi %12, %17 : vector<4x512xi32>
    %c1_i32 = arith.constant 1 : i32
    %19 = vector.broadcast %c1_i32 : i32 to vector<4x512xi32>
    %20 = arith.cmpi sge, %16, %19 : vector<4x512xi32>
    %c15_i32_7 = arith.constant 15 : i32
    %21 = vector.broadcast %c15_i32_7 : i32 to vector<4x512xi32>
    %22 = arith.cmpi slt, %16, %21 : vector<4x512xi32>
    %c1_i32_8 = arith.constant 1 : i32
    %23 = vector.broadcast %c1_i32_8 : i32 to vector<4x512xi32>
    %24 = arith.cmpi sge, %18, %23 : vector<4x512xi32>
    %c15_i32_9 = arith.constant 15 : i32
    %25 = vector.broadcast %c15_i32_9 : i32 to vector<4x512xi32>
    %26 = arith.cmpi slt, %18, %25 : vector<4x512xi32>
    %c17_i32 = arith.constant 17 : i32
    %27 = tpu.dynamic_rotate %11 by %c17_i32 dim 1 : vector<4x512xf32>, i32 -> vector<4x512xf32>
    %28 = arith.andi %20, %24 : vector<4x512xi1>
    %cst_10 = arith.constant 0.000000e+00 : f32
    %29 = vector.broadcast %cst_10 : f32 to vector<4x512xf32>
    %30 = arith.select %28, %27, %29 : vector<4x512xi1>, vector<4x512xf32>
    %c0_11 = arith.constant 0 : index
    %c0_12 = arith.constant 0 : index
    %31 = vector.load %arg4[%c0_11, %c0_12] : memref<40x512xf32, #tpu.memory_space<vmem>>, vector<4x512xf32>
    tpu.vector_store %arg4[%c0_11, %c0_12], %30 {strides = array<i32>} : memref<40x512xf32, #tpu.memory_space<vmem>>, vector<4x512xf32>,
    %c16_i32 = arith.constant 16 : i32
    %32 = tpu.dynamic_rotate %11 by %c16_i32 dim 1 : vector<4x512xf32>, i32 -> vector<4x512xf32>
    %cst_13 = arith.constant 0.000000e+00 : f32
    %33 = vector.broadcast %cst_13 : f32 to vector<4x512xf32>
    %34 = arith.select %20, %32, %33 : vector<4x512xi1>, vector<4x512xf32>
    %c4 = arith.constant 4 : index
    %c0_14 = arith.constant 0 : index
    %35 = vector.load %arg4[%c4, %c0_14] : memref<40x512xf32, #tpu.memory_space<vmem>>, vector<4x512xf32>
    tpu.vector_store %arg4[%c4, %c0_14], %34 {strides = array<i32>} : memref<40x512xf32, #tpu.memory_space<vmem>>, vector<4x512xf32>,
    %c15_i32_15 = arith.constant 15 : i32
    %36 = tpu.dynamic_rotate %11 by %c15_i32_15 dim 1 : vector<4x512xf32>, i32 -> vector<4x512xf32>
    %37 = arith.andi %20, %26 : vector<4x512xi1>
    %cst_16 = arith.constant 0.000000e+00 : f32
    %38 = vector.broadcast %cst_16 : f32 to vector<4x512xf32>
    %39 = arith.select %37, %36, %38 : vector<4x512xi1>, vector<4x512xf32>
    %c8 = arith.constant 8 : index
    %c0_17 = arith.constant 0 : index
    %40 = vector.load %arg4[%c8, %c0_17] : memref<40x512xf32, #tpu.memory_space<vmem>>, vector<4x512xf32>
    tpu.vector_store %arg4[%c8, %c0_17], %39 {strides = array<i32>} : memref<40x512xf32, #tpu.memory_space<vmem>>, vector<4x512xf32>,
    %c1_i32_18 = arith.constant 1 : i32
    %41 = tpu.dynamic_rotate %11 by %c1_i32_18 dim 1 : vector<4x512xf32>, i32 -> vector<4x512xf32>
    %cst_19 = arith.constant 0.000000e+00 : f32
    %42 = vector.broadcast %cst_19 : f32 to vector<4x512xf32>
    %43 = arith.select %24, %41, %42 : vector<4x512xi1>, vector<4x512xf32>
    %c12 = arith.constant 12 : index
    %c0_20 = arith.constant 0 : index
    %44 = vector.load %arg4[%c12, %c0_20] : memref<40x512xf32, #tpu.memory_space<vmem>>, vector<4x512xf32>
    tpu.vector_store %arg4[%c12, %c0_20], %43 {strides = array<i32>} : memref<40x512xf32, #tpu.memory_space<vmem>>, vector<4x512xf32>,
    %c16 = arith.constant 16 : index
    %c0_21 = arith.constant 0 : index
    %45 = vector.load %arg4[%c16, %c0_21] : memref<40x512xf32, #tpu.memory_space<vmem>>, vector<4x512xf32>
    tpu.vector_store %arg4[%c16, %c0_21], %11 {strides = array<i32>} : memref<40x512xf32, #tpu.memory_space<vmem>>, vector<4x512xf32>,
    %c511_i32 = arith.constant 511 : i32
    %46 = tpu.dynamic_rotate %11 by %c511_i32 dim 1 : vector<4x512xf32>, i32 -> vector<4x512xf32>
    %cst_22 = arith.constant 0.000000e+00 : f32
    %47 = vector.broadcast %cst_22 : f32 to vector<4x512xf32>
    %48 = arith.select %26, %46, %47 : vector<4x512xi1>, vector<4x512xf32>
    %c20 = arith.constant 20 : index
    %c0_23 = arith.constant 0 : index
    %49 = vector.load %arg4[%c20, %c0_23] : memref<40x512xf32, #tpu.memory_space<vmem>>, vector<4x512xf32>
    tpu.vector_store %arg4[%c20, %c0_23], %48 {strides = array<i32>} : memref<40x512xf32, #tpu.memory_space<vmem>>, vector<4x512xf32>,
    %c497_i32 = arith.constant 497 : i32
    %50 = tpu.dynamic_rotate %11 by %c497_i32 dim 1 : vector<4x512xf32>, i32 -> vector<4x512xf32>
    %51 = arith.andi %22, %24 : vector<4x512xi1>
    %cst_24 = arith.constant 0.000000e+00 : f32
    %52 = vector.broadcast %cst_24 : f32 to vector<4x512xf32>
    %53 = arith.select %51, %50, %52 : vector<4x512xi1>, vector<4x512xf32>
    %c24 = arith.constant 24 : index
    %c0_25 = arith.constant 0 : index
    %54 = vector.load %arg4[%c24, %c0_25] : memref<40x512xf32, #tpu.memory_space<vmem>>, vector<4x512xf32>
    tpu.vector_store %arg4[%c24, %c0_25], %53 {strides = array<i32>} : memref<40x512xf32, #tpu.memory_space<vmem>>, vector<4x512xf32>,
    %c496_i32 = arith.constant 496 : i32
    %55 = tpu.dynamic_rotate %11 by %c496_i32 dim 1 : vector<4x512xf32>, i32 -> vector<4x512xf32>
    %cst_26 = arith.constant 0.000000e+00 : f32
    %56 = vector.broadcast %cst_26 : f32 to vector<4x512xf32>
    %57 = arith.select %22, %55, %56 : vector<4x512xi1>, vector<4x512xf32>
    %c28 = arith.constant 28 : index
    %c0_27 = arith.constant 0 : index
    %58 = vector.load %arg4[%c28, %c0_27] : memref<40x512xf32, #tpu.memory_space<vmem>>, vector<4x512xf32>
    tpu.vector_store %arg4[%c28, %c0_27], %57 {strides = array<i32>} : memref<40x512xf32, #tpu.memory_space<vmem>>, vector<4x512xf32>,
    %c495_i32 = arith.constant 495 : i32
    %59 = tpu.dynamic_rotate %11 by %c495_i32 dim 1 : vector<4x512xf32>, i32 -> vector<4x512xf32>
    %60 = arith.andi %22, %26 : vector<4x512xi1>
    %cst_28 = arith.constant 0.000000e+00 : f32
    %61 = vector.broadcast %cst_28 : f32 to vector<4x512xf32>
    %62 = arith.select %60, %59, %61 : vector<4x512xi1>, vector<4x512xf32>
    %c32 = arith.constant 32 : index
    %c0_29 = arith.constant 0 : index
    %63 = vector.load %arg4[%c32, %c0_29] : memref<40x512xf32, #tpu.memory_space<vmem>>, vector<4x512xf32>
    tpu.vector_store %arg4[%c32, %c0_29], %62 {strides = array<i32>} : memref<40x512xf32, #tpu.memory_space<vmem>>, vector<4x512xf32>,
    %cst_30 = arith.constant 1.000000e+00 : f32
    %64 = vector.broadcast %cst_30 : f32 to vector<4x512xf32>
    %c36 = arith.constant 36 : index
    %c0_31 = arith.constant 0 : index
    %65 = vector.load %arg4[%c36, %c0_31] : memref<40x512xf32, #tpu.memory_space<vmem>>, vector<4x512xf32>
    tpu.vector_store %arg4[%c36, %c0_31], %64 {strides = array<i32>} : memref<40x512xf32, #tpu.memory_space<vmem>>, vector<4x512xf32>,
    %c0_32 = arith.constant 0 : index
    %c0_33 = arith.constant 0 : index
    %66 = vector.load %arg2[%c0_32, %c0_33] : memref<8x40xf32, #tpu.memory_space<vmem>>, vector<8x40xf32>
    %c0_34 = arith.constant 0 : index
    %c0_35 = arith.constant 0 : index
    %67 = vector.load %arg4[%c0_34, %c0_35] : memref<40x512xf32, #tpu.memory_space<vmem>>, vector<40x512xf32>
    %cst_36 = arith.constant dense<0.000000e+00> : vector<8x512xf32>
    %68 = tpu.matmul %66, %67, %cst_36 {dimension_numbers = #tpu.dot_dimension_numbers<[1], [0], [0], [1], [0, 0, 1, 1], [], []>} : vector<8x40xf32>, vector<40x512xf32>, vector<8x512xf32> -> vector<8x512xf32>
    %cst_37 = arith.constant 0.000000e+00 : f32
    %69 = vector.broadcast %cst_37 : f32 to vector<8x512xf32>
    %70 = arith.cmpf ogt, %68, %69 : vector<8x512xf32>
    %cst_38 = arith.constant 1.000000e-01 : f32
    %71 = vector.broadcast %cst_38 : f32 to vector<8x512xf32>
    %72 = arith.mulf %71, %68 : vector<8x512xf32>
    %73 = arith.select %70, %68, %72 : vector<8x512xi1>, vector<8x512xf32>
    %74 = vector.extract_strided_slice %73 {offsets = [0, 0], sizes = [8, 256], strides = [1, 1]} : vector<8x512xf32> to vector<8x256xf32>
    %c0_39 = arith.constant 0 : index
    %c0_40 = arith.constant 0 : index
    %c0_41 = arith.constant 0 : index
    %75 = vector.load %arg3[%c0_39, %c0_40, %c0_41] : memref<2x8x256xf32, #tpu.memory_space<vmem>>, vector<1x8x256xf32>
    %76 = vector.shape_cast %75 : vector<1x8x256xf32> to vector<8x256xf32>
    %77 = vector.shape_cast %74 : vector<8x256xf32> to vector<1x8x256xf32>
    tpu.vector_store %arg3[%c0_39, %c0_40, %c0_41], %77 {strides = array<i32>} : memref<2x8x256xf32, #tpu.memory_space<vmem>>, vector<1x8x256xf32>,
    %78 = vector.extract_strided_slice %73 {offsets = [0, 256], sizes = [8, 256], strides = [1, 1]} : vector<8x512xf32> to vector<8x256xf32>
    %c1_42 = arith.constant 1 : index
    %c0_43 = arith.constant 0 : index
    %c0_44 = arith.constant 0 : index
    %79 = vector.load %arg3[%c1_42, %c0_43, %c0_44] : memref<2x8x256xf32, #tpu.memory_space<vmem>>, vector<1x8x256xf32>
    %80 = vector.shape_cast %79 : vector<1x8x256xf32> to vector<8x256xf32>
    %81 = vector.shape_cast %78 : vector<8x256xf32> to vector<1x8x256xf32>
    tpu.vector_store %arg3[%c1_42, %c0_43, %c0_44], %81 {strides = array<i32>} : memref<2x8x256xf32, #tpu.memory_space<vmem>>, vector<1x8x256xf32>,
    return
  }
  func.func @transform_0(%arg0: i32) -> (i32, i32, i32) {
    %c0_i32 = arith.constant 0 : i32
    %c0_i32_0 = arith.constant 0 : i32
    %c0_i32_1 = arith.constant 0 : i32
    %c0_i32_2 = arith.constant 0 : i32
    return %c0_i32, %c0_i32_0, %c0_i32_1 : i32, i32, i32
  }
  func.func @transform_1(%arg0: i32) -> (i32, i32) {
    %c0_i32 = arith.constant 0 : i32
    %c0_i32_0 = arith.constant 0 : i32
    %c0_i32_1 = arith.constant 0 : i32
    return %c0_i32, %c0_i32_0 : i32, i32
  }
  func.func @transform_2(%arg0: i32) -> (i32, i32, i32) {
    %c0_i32 = arith.constant 0 : i32
    %c0_i32_0 = arith.constant 0 : i32
    %c0_i32_1 = arith.constant 0 : i32
    %c0_i32_2 = arith.constant 0 : i32
    return %c0_i32, %c0_i32_0, %c0_i32_1 : i32, i32, i32
  }
}

</mosaic_0001>

<bundles_post_ra>
// kernel: tpu_custom_call.1
= control target key start
LH: loop header
LB: loop body
LE: loop exit
PB: predicated region body
PF: predicated region fallthrough
CT: control target
= control target key end

     0   :  { %7 = vsyncpa [#allocation4], 0  ;;  %s972_s0 = inlined_call_operand.hbm [shape: f32[2,4,256], index: 0, kind: input, shape index: {}]   ;;  %s973_s1 = inlined_call_operand.hbm [shape: f32[8,40], index: 1, kind: input, shape index: {}]   ;;  %s974_s2 = inlined_call_operand.hbm [shape: f32[2,8,256], index: 2, kind: output, shape index: {}]  }
   0x1   :  { %8 = vsyncpa [#allocation7], 0 }
   0x2   :  { %9 = vsyncpa [#allocation5], 0  ;;  %s656_s9 = smov [#allocation3]  }
   0x3   :  { %s15_s10 = sshll.u32 %s656_s9, 4  ;;  %s16_s10 = int_to_ptr.vmem [resolvable:$true] %s15_s10 }
   0x4   :  { %s598_s11 = scalar_lea.vmem %s16_s10, 256  ;;  %p603_p1 = scmp.lt.s32.totalorder %s16_s10, %s16_s10 }
   0x5   :  { %p599_p0 = scmp.ne.s32.totalorder %s16_s10, %s598_s11  ;;  %p604_p2 = scmp.lt.s32.totalorder %s598_s11, %s598_s11 }
   0x7   :  { %p605_p3 = por %p604_p2, %p603_p1 }
   0x9   :  { %p606_p4 = pnand %p605_p3, %p599_p0 }
   0xb   :  { %609 = shalt.err (!%p606_p4)
}
   0xc   :  { %s657_s12 = smov 128   ;;  %s658_s13 = smov 8  }
   0xd   :  { %21 = dma.hbm_to_vmem [thread:$0]  %s972_s0, 256, %s16_s10, [#allocation4], %s657_s12, %s657_s12, %s658_s13  }
   0xe   :  { %s659_s16 = smov [#allocation6]  }
   0xf   :  { %s28_s17 = sshll.u32 %s659_s16, 4  ;;  %s29_s17 = int_to_ptr.vmem [resolvable:$true] %s28_s17 }
  0x10   :  { %s618_s18 = scalar_lea.vmem %s29_s17, 128  ;;  %p623_p6 = scmp.lt.s32.totalorder %s29_s17, %s29_s17 }
  0x11   :  { %p619_p5 = scmp.ne.s32.totalorder %s29_s17, %s618_s18  ;;  %p624_p7 = scmp.lt.s32.totalorder %s618_s18, %s618_s18 }
  0x13   :  { %p625_p8 = por %p624_p7, %p623_p6 }
  0x15   :  { %p626_p9 = pnand %p625_p8, %p619_p5 }
  0x17   :  { %629 = shalt.err (!%p626_p9)
}
  0x18   :  { %31 = dma.hbm_to_vmem [thread:$0]  %s973_s1, 128, %s29_s17, [#allocation7]  }
  0x19   :  { %650 = dma.done.wait [#allocation4], 256  }
  0x1a   :  { %651 = vsyncadd [#allocation4], 4294967040 }
  0x1b   :  { %652 = dma.done.wait [#allocation7], 128  }
  0x1c   :  { %653 = vsyncadd [#allocation7], 4294967168  ;;  %v40_v0 = vld [vmem:[#allocation3 + $0x8] sm:$0xff]  ;;  %v38_v1 = vld [vmem:[#allocation3] sm:$0xff]  ;;  %s660_s0 = smov 112   ;;  %v661_v45 = vmov 1.0   ;;  %v63_v47 = vlaneseq }
  0x1d   :  { %v49_v2 = vmul.f32 64.0, %v40_v0  ;;  %v47_v3 = vmul.f32 64.0, %v38_v1  ;;  %v45_v4 = vcombine.high %v40_v0, %v40_v0  ;;  %v42_v5 = vcombine.high %v38_v1, %v38_v1  ;;  %333 = vst [vmem:[#allocation2 + $0x48] sm:$0xf0] %v661_v45  ;;  %332 = vst [vmem:[#allocation2 + $0x20] sm:$0xf0] %v661_v45 }
  0x1e   :  { %334 = vst [vmem:[#allocation2 + $0x70] sm:$0xf0] %v661_v45  ;;  %335 = vst [vmem:[#allocation2 + $0x90] sm:$0xf0] %v661_v45  ;;  %s662_s1 = smov 111   ;;  %s663_s21 = smov 127  }
  0x1f   :  { %v556_v6 = vand.u32 2147483647, %v49_v2  ;;  %v558_v7 = vcvt.f32.s32 %v49_v2  ;;  %v542_v8 = vcvt.f32.s32 %v47_v3  ;;  %v50_v9 = vmul.f32 64.0, %v45_v4  ;;  %s664_s22 = smov 113   ;;  %s665_s23 = smov 1  }
  0x20   :  { %v48_v10 = vmul.f32 64.0, %v42_v5  ;;  %v561_v12 = vand.u32 2147483648, %v49_v2  ;;  %v540_v13 = vand.u32 2147483647, %v47_v3  ;;  %v545_v15 = vand.u32 2147483648, %v47_v3  ;;  %s666_s24 = smov 16  }
  0x21   :  { %v559_v11 = vcvt.s32.f32 %v558_v7  ;;  %v543_v14 = vcvt.s32.f32 %v542_v8  ;;  %v566_v16 = vcvt.f32.s32 %v50_v9  ;;  %vm693_vm0 = vcmp.lt.f32.partialorder %v556_v6, 8388608.0  ;;  %s667_s25 = smov 15   ;;  %s668_s26 = smov 17  }
  0x22   :  { %v564_v19 = vand.u32 2147483647, %v50_v9  ;;  %v550_v20 = vcvt.f32.s32 %v48_v10  ;;  %v569_v23 = vand.u32 2147483648, %v50_v9  ;;  %v548_v24 = vand.u32 2147483647, %v48_v10  ;;  %s670_s27 = smov [#allocation8]  }
  0x23   :  { %v560_v18 = vand.u32 2147483647, %v559_v11  ;;  %v544_v21 = vand.u32 2147483647, %v543_v14  ;;  %v567_v22 = vcvt.s32.f32 %v566_v16  ;;  %vm541_vm1 = vcmp.lt.f32.partialorder %v540_v13, 8388608.0  ;;  %s525_s28 = sshll.u32 %s670_s27, 4  ;;  %s526_s28 = int_to_ptr.vmem [resolvable:$true] %s525_s28 }
  0x24   :  { %v551_v26 = vcvt.s32.f32 %v550_v20  ;;  %v553_v27 = vand.u32 2147483648, %v48_v10  ;;  %vm565_vm2 = vcmp.lt.f32.partialorder %v564_v19, 8388608.0  ;;  %vm549_vm3 = vcmp.lt.f32.partialorder %v548_v24, 8388608.0  ;;  %s630_s29 = scalar_lea.vmem %s526_s28, 512  ;;  %p635_p11 = scmp.lt.s32.totalorder %s526_s28, %s526_s28 }
  0x25   :  { %v562_v25 = vor.u32 %v561_v12, %v560_v18  ;;  %v546_v28 = vor.u32 %v545_v15, %v544_v21  ;;  %v568_v29 = vand.u32 2147483647, %v567_v22  ;;  %v669_v46 = vmov 0.0   ;;  %p631_p10 = scmp.ne.s32.totalorder %s526_s28, %s630_s29  ;;  %p636_p12 = scmp.lt.s32.totalorder %s630_s29, %s630_s29 }
  0x26   :  { %v552_v31 = vand.u32 2147483647, %v551_v26  ;;  %425 = vmatprep.mubr.f32.mxu0 %v669_v46  ;;  %496 = vmatprep.mubr.f32.mxu1 %v669_v46  ;;  %v703_v48 = vand.u32 127, %v63_v47 }
  0x27   :  { %v563_v30 = vsel %vm693_vm0, %v562_v25, %v49_v2  ;;  %v547_v33 = vsel %vm541_vm1, %v546_v28, %v47_v3  ;;  %v570_v34 = vor.u32 %v569_v23, %v568_v29  ;;  %p637_p13 = por %p636_p12, %p635_p11 }
  0x28   :  { %v57_v32 = vmax.f32 %v563_v30, -128.0  ;;  %v55_v35 = vmax.f32 %v547_v33, -128.0  ;;  %v554_v36 = vor.u32 %v553_v27, %v552_v31  ;;  %v706_v49 = vadd.s32 256, %v703_v48 }
  0x29   :  { %v571_v38 = vsel %vm565_vm2, %v570_v34, %v50_v9  ;;  %v709_v50 = vadd.s32 384, %v703_v48  ;;  %v712_v51 = vadd.s32 128, %v703_v48  ;;  %v68_v54 = vshra.s32 %v703_v48, 4  ;;  %p638_p0 = pnand %p637_p13, %p631_p10 }
  0x2a   :  { %v61_v37 = vmin.f32 %v57_v32, 127.0  ;;  %v59_v39 = vmin.f32 %v55_v35, 127.0  ;;  %v58_v40 = vmax.f32 %v571_v38, -128.0  ;;  %v555_v41 = vsel %vm549_vm3, %v554_v36, %v48_v10 }
  0x2b   :  { %v56_v42 = vmax.f32 %v555_v41, -128.0  ;;  %v70_v52 = vshra.s32 %v706_v49, 4  ;;  %v71_v53 = vshra.s32 %v709_v50, 4  ;;  %v69_v55 = vshra.s32 %v712_v51, 4 }
  0x2c   :  { %278 = vrot.lane.b32.xlu1 %v61_v37, %s660_s0  ;;  %214 = vst [vmem:[#allocation2 + $0x28] sm:$0xf] %v61_v37  ;;  %274 = vrot.lane.b32.xlu0 %v59_v39, %s660_s0  ;;  %212 = vst [vmem:[#allocation2 + $0x8] sm:$0xf] %v59_v39  ;;  %v62_v43 = vmin.f32 %v58_v40, 127.0  ;;  %v724_v59 = vand.u32 15, %v68_v54 }
  0x2d   :  { %v60_v44 = vmin.f32 %v56_v42, 127.0  ;;  %v718_v56 = vand.u32 15, %v70_v52  ;;  %v720_v57 = vand.u32 15, %v71_v53  ;;  %v76_v60 = vand.u32 15, %v703_v48 }
  0x2e   :  { %215 = vst [vmem:[#allocation2 + $0x40] sm:$0xf] %v62_v43  ;;  %v729_v62 = vand.u32 15, %v69_v55  ;;  %v77_v63 = vand.u32 15, %v712_v51  ;;  %vm282_vm4 = vcmp.lt.s32.totalorder %v703_v48, 112  ;;  %v78_v0 = vand.u32 15, %v706_v49 }
  0x2f   :  { %213 = vst [vmem:[#allocation2 + $0x88] sm:$0xf] %v60_v44  ;;  %vm86_vm5 = vcmp.lt.s32.totalorder %v718_v56, 15  ;;  %vm87_vm6 = vcmp.lt.s32.totalorder %v720_v57, 15  ;;  %vm84_vm7 = vcmp.lt.s32.totalorder %v724_v59, 15  ;;  %vm737_vm8 = vcmp.lt.s32.totalorder %v76_v60, 15 }
  0x30   :  { %280 = vrot.lane.b32.xlu1 %v62_v43, %s660_s0  ;;  %307 = vrot.lane.b32.xlu0 %v59_v39, %s662_s1  ;;  %v79_v3 = vand.u32 15, %v709_v50  ;;  %vm85_vm9 = vcmp.lt.s32.totalorder %v729_v62, 15  ;;  %vm751_vm10 = vcmp.lt.s32.totalorder %v77_v63, 15  ;;  %vm315_vm11 = vcmp.lt.s32.totalorder %v703_v48, 111  ;;  %vm320_vm12 = vmand %vm84_vm7, %vm737_vm8 }
  0x31   :  { %vm766_vm13 = vcmp.lt.s32.totalorder %v78_v0, 15  ;;  %vm321_vm14 = vmand %vm85_vm9, %vm751_vm10  ;;  %vm224_vm2 = vcmp.lt.s32.totalorder %v703_v48, 127  ;;  %vm805_vm3 = vcmp.ge.s32.totalorder %v76_v60, 1 }
  0x32   :  { %vm776_vm15 = vcmp.lt.s32.totalorder %v79_v3, 15  ;;  %vm322_vm0 = vmand %vm86_vm5, %vm766_vm13 }
  0x33   :  { %vm323_vm1 = vmand %vm87_vm6, %vm776_vm15 }
  0x34   :  { %309 = vrot.lane.b32.xlu1 %v60_v44, %s662_s1  ;;  %311 = vrot.lane.b32.xlu0 %v61_v37, %s662_s1 }
  0x38   :  { %313 = vrot.lane.b32.xlu1 %v62_v43, %s662_s1  ;;  %216 = vrot.lane.b32.xlu0 %v59_v39, %s663_s21 }
  0x3c   :  { %218 = vrot.lane.b32.xlu1 %v60_v44, %s663_s21  ;;  %220 = vrot.lane.b32.xlu0 %v61_v37, %s663_s21 }
  0x40   :  { %222 = vrot.lane.b32.xlu1 %v62_v43, %s663_s21  ;;  %249 = vrot.lane.b32.xlu0 %v59_v39, %s664_s22 }
  0x44   :  { %251 = vrot.lane.b32.xlu1 %v60_v44, %s664_s22  ;;  %276 = vrot.lane.b32.xlu0 %v60_v44, %s660_s0 }
  0x48   :  { %255 = vrot.lane.b32.xlu1 %v62_v43, %s664_s22  ;;  %253 = vrot.lane.b32.xlu0 %v61_v37, %s664_s22 }
  0x4c   :  { %181 = vrot.lane.b32.xlu1 %v60_v44, %s665_s23  ;;  %179 = vrot.lane.b32.xlu0 %v59_v39, %s665_s23 }
  0x50   :  { %185 = vrot.lane.b32.xlu1 %v62_v43, %s665_s23  ;;  %183 = vrot.lane.b32.xlu0 %v61_v37, %s665_s23 }
  0x54   :  { %123 = vrot.lane.b32.xlu1 %v60_v44, %s666_s24  ;;  %121 = vrot.lane.b32.xlu0 %v59_v39, %s666_s24 }
  0x58   :  { %127 = vrot.lane.b32.xlu1 %v62_v43, %s666_s24  ;;  %125 = vrot.lane.b32.xlu0 %v61_v37, %s666_s24 }
  0x5c   :  { %156 = vrot.lane.b32.xlu1 %v60_v44, %s667_s25  ;;  %154 = vrot.lane.b32.xlu0 %v59_v39, %s667_s25 }
  0x60   :  { %160 = vrot.lane.b32.xlu1 %v62_v43, %s667_s25  ;;  %158 = vrot.lane.b32.xlu0 %v61_v37, %s667_s25 }
  0x64   :  { %98 = vrot.lane.b32.xlu1 %v60_v44, %s668_s26  ;;  %96 = vrot.lane.b32.xlu0 %v59_v39, %s668_s26 }
  0x68   :  { %102 = vrot.lane.b32.xlu1 %v62_v43, %s668_s26  ;;  %100 = vrot.lane.b32.xlu0 %v61_v37, %s668_s26 }
  0x9e   :  { %v722_v58 = vpop.permute.xlu1 %278  ;;  %v727_v61 = vpop.permute.xlu0 %274 }
  0xa2   :  { %v281_v1 = vpop.permute.xlu1 %280  ;;  %v308_v6 = vpop.permute.xlu0 %307 }
  0xa3   :  { %v283_v4 = vsel %vm282_vm4, %v722_v58, %v281_v1  ;;  %v286_v5 = vsel %vm282_vm4, %v281_v1, %v727_v61 }
  0xa4   :  { %v289_v8 = vsel %vm86_vm5, %v283_v4, 0.0  ;;  %v290_v9 = vsel %vm87_vm6, %v286_v5, 0.0 }
  0xa5   :  { %v297_v10 = vrot.slane %v289_v8, 4  ;;  %v298_v11 = vrot.slane %v290_v9, 4 }
  0xa6   :  { %v310_v13 = vpop.permute.xlu1 %309  ;;  %v312_v15 = vpop.permute.xlu0 %311 }
  0xa7   :  { %305 = vst [vmem:[#allocation2 + $0x98] sm:$0xf0] %v297_v10  ;;  %306 = vst [vmem:[#allocation2 + $0x60] sm:$0xf0] %v298_v11  ;;  %v318_v16 = vsel %vm315_vm11, %v308_v6, %v310_v13  ;;  %v317_v17 = vsel %vm315_vm11, %v310_v13, %v312_v15 }
  0xa8   :  { %v324_v18 = vsel %vm320_vm12, %v318_v16, 0.0  ;;  %v325_v19 = vsel %vm321_vm14, %v317_v17, 0.0  ;;  %vm262_vm12 = vmand %vm84_vm7, %vm805_vm3  ;;  %vm824_vm14 = vcmp.ge.s32.totalorder %v79_v3, 1 }
  0xa9   :  { %328 = vst [vmem:[#allocation2 + $0x20] sm:$0xf] %v324_v18  ;;  %329 = vst [vmem:[#allocation2 + $0x48] sm:$0xf] %v325_v19 }
  0xaa   :  { %v314_v20 = vpop.permute.xlu1 %313  ;;  %v217_v21 = vpop.permute.xlu0 %216 }
  0xab   :  { %v316_v22 = vsel %vm315_vm11, %v312_v15, %v314_v20  ;;  %v319_v23 = vsel %vm315_vm11, %v314_v20, %v308_v6  ;;  %vm257_vm11 = vcmp.lt.s32.totalorder %v703_v48, 113 }
  0xac   :  { %v326_v24 = vsel %vm322_vm0, %v316_v22, 0.0  ;;  %v327_v25 = vsel %vm323_vm1, %v319_v23, 0.0  ;;  %vm830_vm0 = vcmp.ge.s32.totalorder %v77_v63, 1  ;;  %vm838_vm1 = vcmp.ge.s32.totalorder %v78_v0, 1 }
  0xad   :  { %330 = vst [vmem:[#allocation2 + $0x70] sm:$0xf] %v326_v24  ;;  %331 = vst [vmem:[#allocation2 + $0x90] sm:$0xf] %v327_v25 }
  0xae   :  { %v219_v26 = vpop.permute.xlu1 %218  ;;  %v221_v27 = vpop.permute.xlu0 %220 }
  0xaf   :  { %v227_v28 = vsel %vm224_vm2, %v217_v21, %v219_v26  ;;  %v226_v29 = vsel %vm224_vm2, %v219_v26, %v221_v27 }
  0xb0   :  { %v229_v30 = vsel %vm737_vm8, %v227_v28, 0.0  ;;  %v353_v31 = vld [vmem:[#allocation2 + $0x20] sm:$0xff]  ;;  %v230_v32 = vsel %vm751_vm10, %v226_v29, 0.0  ;;  %v354_v34 = vld [vmem:[#allocation2 + $0x48] sm:$0xff] }
  0xb1   :  { %v237_v33 = vrot.slane %v229_v30, 4  ;;  %v238_v35 = vrot.slane %v230_v32, 4  ;;  %383 = vmatprep.subr.mxu0 %v354_v34 }
  0xb2   :  { %v223_v36 = vpop.permute.xlu1 %222  ;;  %v250_v38 = vpop.permute.xlu0 %249  ;;  %384 = vmatpush1.msra.mxu0 %v353_v31 }
  0xb3   :  { %245 = vst [vmem:[#allocation2 + $0x8] sm:$0xf0] %v237_v33  ;;  %v225_v39 = vsel %vm224_vm2, %v221_v27, %v223_v36  ;;  %v228_v40 = vsel %vm224_vm2, %v223_v36, %v217_v21  ;;  %246 = vst [vmem:[#allocation2 + $0x88] sm:$0xf0] %v238_v35 }
  0xb4   :  { %v231_v41 = vsel %vm766_vm13, %v225_v39, 0.0  ;;  %v232_v42 = vsel %vm776_vm15, %v228_v40, 0.0  ;;  %v356_v43 = vld [vmem:[#allocation2 + $0x90] sm:$0xff]  ;;  %vm852_vm2 = vmand %vm87_vm6, %vm824_vm14 }
  0xb5   :  { %v355_v44 = vld [vmem:[#allocation2 + $0x70] sm:$0xff]  ;;  %v239_v45 = vrot.slane %v231_v41, 4  ;;  %v240_v46 = vrot.slane %v232_v42, 4  ;;  %454 = vmatprep.subr.mxu1 %v356_v43  ;;  %vm264_vm6 = vmand %vm86_vm5, %vm838_vm1  ;;  %vm187_vm5 = vcmp.lt.s32.totalorder %v703_v48, 1 }
  0xb6   :  { %455 = vmatpush1.msra.mxu1 %v355_v44  ;;  %v252_v52 = vpop.permute.xlu1 %251  ;;  %v277_v55 = vpop.permute.xlu0 %276 }
  0xb7   :  { %247 = vst [vmem:[#allocation2 + $0x28] sm:$0xf0] %v239_v45  ;;  %248 = vst [vmem:[#allocation2 + $0x40] sm:$0xf0] %v240_v46  ;;  %v260_v54 = vsel %vm257_vm11, %v250_v38, %v252_v52  ;;  %v284_v51 = vsel %vm282_vm4, %v277_v55, %v722_v58  ;;  %v285_v63 = vsel %vm282_vm4, %v727_v61, %v277_v55 }
  0xb8   :  { %v266_v60 = vsel %vm262_vm12, %v260_v54, 0.0  ;;  %v287_v49 = vsel %vm84_vm7, %v285_v63, 0.0  ;;  %v288_v0 = vsel %vm85_vm9, %v284_v51, 0.0  ;;  %vm864_vm4 = vmand %vm85_vm9, %vm830_vm0  ;;  %vm129_vm7 = vcmp.lt.s32.totalorder %v703_v48, 16 }
  0xb9   :  { %270 = vst [vmem:[#allocation2 + $0x58] sm:$0xf] %v266_v60  ;;  %v295_v61 = vrot.slane %v287_v49, 4  ;;  %v296_v3 = vrot.slane %v288_v0, 4  ;;  %vm81_vm9 = vcmp.ge.s32.totalorder %v729_v62, 1  ;;  %vm82_vm12 = vcmp.ge.s32.totalorder %v718_v56, 1 }
  0xba   :  { %v256_v4 = vpop.permute.xlu1 %255  ;;  %v254_v6 = vpop.permute.xlu0 %253  ;;  %v346_v39 = vld [vmem:[#allocation2 + $0x88] sm:$0xff] }
  0xbb   :  { %v261_v5 = vsel %vm257_vm11, %v256_v4, %v250_v38  ;;  %303 = vst [vmem:[#allocation2 + $0x58] sm:$0xf0] %v295_v61  ;;  %304 = vst [vmem:[#allocation2 + $0x10] sm:$0xf0] %v296_v3  ;;  %v258_v9 = vsel %vm257_vm11, %v254_v6, %v256_v4  ;;  %v259_v10 = vsel %vm257_vm11, %v252_v52, %v254_v6  ;;  %v345_v42 = vld [vmem:[#allocation2 + $0x8] sm:$0xff]  ;;  %vm80_vm11 = vcmp.ge.s32.totalorder %v724_v59, 1 }
  0xbc   :  { %v269_v8 = vsel %vm852_vm2, %v261_v5, 0.0  ;;  %v267_v11 = vsel %vm864_vm4, %v259_v10, 0.0  ;;  %v268_v13 = vsel %vm264_vm6, %v258_v9, 0.0  ;;  %vm83_vm2 = vcmp.ge.s32.totalorder %v720_v57, 1  ;;  %vm168_vm6 = vmand %vm81_vm9, %vm751_vm10 }
  0xbd   :  { %273 = vst [vmem:[#allocation2 + $0x60] sm:$0xf] %v269_v8  ;;  %271 = vst [vmem:[#allocation2 + $0x10] sm:$0xf] %v267_v11  ;;  %vm162_vm4 = vcmp.lt.s32.totalorder %v703_v48, 15 }
  0xbe   :  { %272 = vst [vmem:[#allocation2 + $0x98] sm:$0xf] %v268_v13  ;;  %v182_v15 = vpop.permute.xlu1 %181  ;;  %v180_v16 = vpop.permute.xlu0 %179  ;;  %v348_v36 = vld [vmem:[#allocation2 + $0x40] sm:$0xff]  ;;  %v347_v40 = vld [vmem:[#allocation2 + $0x28] sm:$0xff]  ;;  %vm170_vm10 = vmand %vm83_vm2, %vm776_vm15 }
  0xbf   :  { %v190_v17 = vsel %vm187_vm5, %v180_v16, %v182_v15  ;;  %vm109_vm15 = vmand %vm80_vm11, %vm805_vm3 }
  0xc0   :  { %v193_v18 = vsel %vm830_vm0, %v190_v17, 0.0 }
  0xc1   :  { %v201_v19 = vrot.slane %v193_v18, 4 }
  0xc2   :  { %v186_v20 = vpop.permute.xlu1 %185  ;;  %v184_v22 = vpop.permute.xlu0 %183  ;;  %v349_v35 = vld [vmem:[#allocation2 + $0x58] sm:$0xff] }
  0xc3   :  { %v191_v21 = vsel %vm187_vm5, %v186_v20, %v180_v16  ;;  %209 = vst [vmem:[#allocation2 + $0x68] sm:$0xf0] %v201_v19  ;;  %v188_v24 = vsel %vm187_vm5, %v184_v22, %v186_v20  ;;  %v189_v25 = vsel %vm187_vm5, %v182_v15, %v184_v22  ;;  %vm167_vm5 = vmand %vm80_vm11, %vm737_vm8  ;;  %vm104_vm8 = vcmp.lt.s32.totalorder %v703_v48, 17  ;;  %v336_v22 = vld [vmem:[#allocation6] sm:$0xff] }
  0xc4   :  { %v192_v23 = vsel %vm805_vm3, %v191_v21, 0.0  ;;  %v352_v26 = vld [vmem:[#allocation2 + $0x60] sm:$0xff]  ;;  %v194_v28 = vsel %vm838_vm1, %v189_v25, 0.0  ;;  %v195_v29 = vsel %vm824_vm14, %v188_v24, 0.0  ;;  %v350_v30 = vld [vmem:[#allocation2 + $0x10] sm:$0xff]  ;;  %vm357_vm3 = vcmask 326656  }
  0xc5   :  { %v200_v27 = vrot.slane %v192_v23, 4  ;;  %456 = vmatprep.subr.mxu1 %v352_v26  ;;  %v351_v31 = vld [vmem:[#allocation2 + $0x98] sm:$0xff]  ;;  %v202_v32 = vrot.slane %v194_v28, 4  ;;  %v203_v33 = vrot.slane %v195_v29, 4  ;;  %385 = vmatprep.subr.mxu0 %v350_v30 }
  0xc6   :  { %v124_v34 = vpop.permute.xlu1 %123  ;;  %457 = vmatpush1.msra.mxu1 %v351_v31  ;;  %386 = vmatpush1.msra.mxu0 %v349_v35  ;;  %v122_v38 = vpop.permute.xlu0 %121 }
  0xc7   :  { %208 = vst [vmem:[#allocation2 + $0x30] sm:$0xf0] %v200_v27  ;;  %458 = vmatprep.subr.mxu1 %v348_v36  ;;  %210 = vst [vmem:[#allocation2 + $0x78] sm:$0xf0] %v202_v32  ;;  %v132_v41 = vsel %vm129_vm7, %v122_v38, %v124_v34  ;;  %387 = vmatprep.subr.mxu0 %v346_v39 }
  0xc8   :  { %211 = vst [vmem:[#allocation2 + $0x80] sm:$0xf0] %v203_v33  ;;  %459 = vmatpush1.msra.mxu1 %v347_v40  ;;  %v135_v43 = vsel %vm81_vm9, %v132_v41, 0.0  ;;  %388 = vmatpush1.msra.mxu0 %v345_v42 }
  0xc9   :  { %v143_v44 = vrot.slane %v135_v43, 4 }
  0xca   :  { %v128_v45 = vpop.permute.xlu1 %127  ;;  %v126_v52 = vpop.permute.xlu0 %125 }
  0xcb   :  { %v133_v46 = vsel %vm129_vm7, %v128_v45, %v122_v38  ;;  %151 = vst [vmem:[#allocation2 + $0x38] sm:$0xf0] %v143_v44  ;;  %v130_v55 = vsel %vm129_vm7, %v126_v52, %v128_v45  ;;  %v131_v60 = vsel %vm129_vm7, %v124_v34, %v126_v52  ;;  %vm169_vm7 = vmand %vm82_vm12, %vm766_vm13 }
  0xcc   :  { %v134_v54 = vsel %vm80_vm11, %v133_v46, 0.0  ;;  %v136_v63 = vsel %vm82_vm12, %v131_v60, 0.0  ;;  %v137_v1 = vsel %vm83_vm2, %v130_v55, 0.0  ;;  %vm110_vm13 = vmand %vm81_vm9, %vm830_vm0 }
  0xcd   :  { %v142_v51 = vrot.slane %v134_v54, 4  ;;  %v144_v49 = vrot.slane %v136_v63, 4  ;;  %v145_v0 = vrot.slane %v137_v1, 4  ;;  %vm112_vm0 = vmand %vm83_vm2, %vm824_vm14 }
  0xce   :  { %v157_v58 = vpop.permute.xlu1 %156  ;;  %v155_v61 = vpop.permute.xlu0 %154 }
  0xcf   :  { %150 = vst [vmem:[#allocation2] sm:$0xf0] %v142_v51  ;;  %152 = vst [vmem:[#allocation2 + $0x50] sm:$0xf0] %v144_v49  ;;  %v165_v3 = vsel %vm162_vm4, %v155_v61, %v157_v58 }
  0xd0   :  { %153 = vst [vmem:[#allocation2 + $0x18] sm:$0xf0] %v145_v0  ;;  %v172_v4 = vsel %vm168_vm6, %v165_v3, 0.0 }
  0xd1   :  { %176 = vst [vmem:[#allocation2 + $0x68] sm:$0xf] %v172_v4 }
  0xd2   :  { %v161_v7 = vpop.permute.xlu1 %160  ;;  %v159_v2 = vpop.permute.xlu0 %158 }
  0xd3   :  { %v166_v5 = vsel %vm162_vm4, %v161_v7, %v155_v61  ;;  %v163_v8 = vsel %vm162_vm4, %v159_v2, %v161_v7  ;;  %v164_v12 = vsel %vm162_vm4, %v157_v58, %v159_v2  ;;  %vm952_vm4 = vmand %vm82_vm12, %vm838_vm1 }
  0xd4   :  { %v171_v6 = vsel %vm167_vm5, %v166_v5, 0.0  ;;  %v173_v9 = vsel %vm169_vm7, %v164_v12, 0.0  ;;  %v174_v10 = vsel %vm170_vm10, %v163_v8, 0.0 }
  0xd5   :  { %175 = vst [vmem:[#allocation2 + $0x30] sm:$0xf] %v171_v6  ;;  %177 = vst [vmem:[#allocation2 + $0x78] sm:$0xf] %v173_v9 }
  0xd6   :  { %178 = vst [vmem:[#allocation2 + $0x80] sm:$0xf] %v174_v10  ;;  %v99_v14 = vpop.permute.xlu1 %98  ;;  %v97_v11 = vpop.permute.xlu0 %96 }
  0xd7   :  { %v107_v13 = vsel %vm104_vm8, %v97_v11, %v99_v14 }
  0xd8   :  { %v114_v15 = vsel %vm110_vm13, %v107_v13, 0.0  ;;  %v342_v16 = vld [vmem:[#allocation2 + $0x68] sm:$0xff] }
  0xd9   :  { %118 = vst [vmem:[#allocation2 + $0x38] sm:$0xf] %v114_v15  ;;  %389 = vmatprep.subr.mxu0 %v342_v16 }
  0xda   :  { %v103_v62 = vpop.permute.xlu1 %102  ;;  %v101_v37 = vpop.permute.xlu0 %100 }
  0xdb   :  { %v108_v59 = vsel %vm104_vm8, %v103_v62, %v97_v11  ;;  %v105_v56 = vsel %vm104_vm8, %v101_v37, %v103_v62  ;;  %v106_v50 = vsel %vm104_vm8, %v99_v14, %v101_v37 }
  0xdc   :  { %v113_v17 = vsel %vm109_vm15, %v108_v59, 0.0  ;;  %v341_v18 = vld [vmem:[#allocation2 + $0x30] sm:$0xff]  ;;  %v115_v19 = vsel %vm952_vm4, %v106_v50, 0.0  ;;  %v116_v47 = vsel %vm112_vm0, %v105_v56, 0.0  ;;  %v343_v20 = vld [vmem:[#allocation2 + $0x78] sm:$0xff] }
  0xdd   :  { %117 = vst [vmem:[#allocation2] sm:$0xf] %v113_v17  ;;  %390 = vmatpush1.msra.mxu0 %v341_v18  ;;  %v344_v57 = vld [vmem:[#allocation2 + $0x80] sm:$0xff]  ;;  %119 = vst [vmem:[#allocation2 + $0x50] sm:$0xf] %v115_v19 }
  0xde   :  { %120 = vst [vmem:[#allocation2 + $0x18] sm:$0xf] %v116_v47  ;;  %460 = vmatprep.subr.mxu1 %v344_v57 }
  0xdf   :  { %461 = vmatpush1.msra.mxu1 %v343_v20 }
  0xe0   :  { %v338_v21 = vld [vmem:[#allocation2 + $0x38] sm:$0xff] }
  0xe1   :  { %391 = vmatprep.subr.mxu0 %v338_v21 }
  0xe4   :  { %v337_v23 = vld [vmem:[#allocation2] sm:$0xff]  ;;  %v339_v24 = vld [vmem:[#allocation2 + $0x50] sm:$0xff] }
  0xe5   :  { %392 = vmatpush1.msra.mxu0 %v337_v23  ;;  %v340_v48 = vld [vmem:[#allocation2 + $0x18] sm:$0xff] }
  0xe6   :  { %462 = vmatprep.subr.mxu1 %v340_v48  ;;  %538 = vmatmul.mubr.msk.f32.vlgmr.msra.gmra.mxu0 %vm357_vm3, %v336_v22 }
  0xe7   :  { %463 = vmatpush1.msra.mxu1 %v339_v24 }
  0xe8   :  { %539 = vmatmul.mubr.msk.f32.vlgmr.msra.gmra.mxu1 %vm357_vm3, %v336_v22 }
 0x1a6   :  { %v427_v25 = vpop.f32.mrf.mxu0 }
 0x1a7   :  { %vm503_vm14 = vcmp.gt.f32.partialorder %v427_v25, 0.0  ;;  %v507_v26 = vmul.f32 0.1, %v427_v25 }
 0x1a8   :  { %v498_v27 = vpop.f32.mrf.mxu1  ;;  %v429_v28 = vpop.f32.mrf.mxu0 }
 0x1a9   :  { %v511_v29 = vsel %vm503_vm14, %v427_v25, %v507_v26  ;;  %vm505_vm1 = vcmp.gt.f32.partialorder %v498_v27, 0.0  ;;  %v509_v30 = vmul.f32 0.1, %v498_v27  ;;  %vm504_vm9 = vcmp.gt.f32.partialorder %v429_v28, 0.0 }
 0x1aa   :  { %515 = vst [vmem:[#allocation8] sm:$0xff] %v511_v29  ;;  %v508_v31 = vmul.f32 0.1, %v429_v28  ;;  %v500_v32 = vpop.f32.mrf.mxu1 }
 0x1ab   :  { %v513_v33 = vsel %vm505_vm1, %v498_v27, %v509_v30  ;;  %vm506_vm11 = vcmp.gt.f32.partialorder %v500_v32, 0.0  ;;  %v510_v34 = vmul.f32 0.1, %v500_v32 }
 0x1ac   :  { %518 = vst [vmem:[#allocation8 + $0x10] sm:$0xff] %v513_v33  ;;  %v512_v35 = vsel %vm504_vm9, %v429_v28, %v508_v31 }
 0x1ad   :  { %516 = vst [vmem:[#allocation8 + $0x8] sm:$0xff] %v512_v35  ;;  %v514_v36 = vsel %vm506_vm11, %v500_v32, %v510_v34 }
 0x1ae   :  { %519 = vst [vmem:[#allocation8 + $0x18] sm:$0xff] %v514_v36 }
 0x1af   :  { %641 = shalt.err (!%p638_p0)
}
 0x1b0   :  { %s671_s30 = smov 256  }
 0x1b1   :  { %531 = dma.vmem_to_hbm [thread:$0]  %s526_s28, 512, %s974_s2, [#allocation5], %s671_s30, %s671_s30, %s666_s24  }
 0x1b2   :  { %654 = dma.done.wait [#allocation5], 512  }
 0x1b3   :  { %655 = vsyncadd [#allocation5], 4294966784 }
 0x1b4   :  { %535 = vsyncpa [#allocation4], 1 }
 0x1b5   :  { %536 = vsyncpa [#allocation7], 1 }
 0x1b6   :  { %537 = vsyncpa [#allocation5], 1 }

</bundles_post_ra>
